<compile_context>
chip_gen: v7x
topology: tpu7x:2x2x1
jax: 0.10.0
libtpu: 0.0.40
codegen_flags: <defaults>
</compile_context>

<pallas_src>
import jax
import jax.numpy as jnp
from jax.experimental import pallas as pl
from jax.experimental.pallas import tpu as pltpu

EPS = 1e-5


def _bn_train_t(h, inv_b):
    """BatchNorm1d (training mode) on a feature-major (width, B) f32 tensor.

    Two-pass statistics around the mean (PyTorch's formulation, no E[h^2]-m^2
    cancellation).  `inv_b` is a hoisted 1/B constant so no per-layer divides
    are emitted; lane-axis reductions go to the XLU, rsqrt to the EUP.
    """
    mean = jnp.sum(h, axis=1, keepdims=True) * inv_b
    d = h - mean
    var = jnp.sum(d * d, axis=1, keepdims=True) * inv_b
    return d * jax.lax.rsqrt(var + EPS)


def _relu_bf16(h):
    """ReLU with the bf16 cast for the next MXU matmul fused into the epilogue."""
    return jnp.maximum(h, 0.0).astype(jnp.bfloat16)


def _make_kernel(batch):
    inv_b = 1.0 / float(batch)  # hoisted constant, shared by all BN layers

    def kernel(xt_ref, w_e1, w_e2, w_b, w_d1, w_d2, w_d3, out_ref):
        # Whole forward pass in one invocation (whole batch resident in VMEM,
        # as required by training-mode BatchNorm batch statistics).
        a = xt_ref[...]                                                   # (F, B) bf16

        # ---- encoder ----
        h = jnp.dot(w_e1[...], a, preferred_element_type=jnp.float32)    # (64, B) f32
        a = _relu_bf16(_bn_train_t(h, inv_b))
        h = jnp.dot(w_e2[...], a, preferred_element_type=jnp.float32)    # (32, B) f32
        a = _relu_bf16(_bn_train_t(h, inv_b))

        # ---- bottleneck ----
        h = jnp.dot(w_b[...], a, preferred_element_type=jnp.float32)     # (32, B) f32
        a = _relu_bf16(h)                                                 # output_activation

        # ---- decoder ----
        h = jnp.dot(w_d1[...], a, preferred_element_type=jnp.float32)    # (32, B) f32
        a = _relu_bf16(_bn_train_t(h, inv_b))
        h = jnp.dot(w_d2[...], a, preferred_element_type=jnp.float32)    # (64, B) f32
        a = _relu_bf16(_bn_train_t(h, inv_b))
        out_ref[...] = jnp.dot(w_d3[...], a,
                               preferred_element_type=jnp.float32)       # (F, B) f32

    return kernel


def _vmem_budget_bytes():
    """~75% of this generation's VMEM capacity; falls back to the smallest
    current-generation capacity (v7x: 64 MiB per TensorCore) if unqueryable."""
    cap = 64 * 1024 * 1024
    try:
        info = pltpu.get_tpu_info()
        cap = int(getattr(info, "vmem_capacity_bytes", cap)) or cap
    except Exception:
        pass
    return (cap * 3) // 4


def autoencoder_forward(x, params):
    """x: (B, F) float32.  params: 6 bf16 weights in PyTorch (out, in) layout."""
    B, F = x.shape

    # Resident working-set estimate (feature-major: lanes = lane-padded batch):
    # ~8 live full-width f32 activation slabs + bf16 x + f32 out + weights/slack.
    bp = ((B + 127) // 128) * 128
    wmax = max(64, F)
    est = bp * (4 * (8 * wmax + F) + 2 * F) + (2 << 20)
    budget = _vmem_budget_bytes()
    if est > budget:
        raise ValueError(
            f"Estimated VMEM working set {est / 2**20:.1f} MiB exceeds budget "
            f"{budget / 2**20:.1f} MiB for batch={B}; tile the batch with a "
            "two-pass BatchNorm restructuring instead of raising the limit."
        )

    # Tiny XLA-side transpose + bf16 cast: halves input DMA bytes and makes the
    # kernel-internal layout lane-dense.
    xt = jnp.transpose(x).astype(jnp.bfloat16)                            # (F, B) bf16

    vmem_full = pl.BlockSpec(memory_space=pltpu.VMEM)
    out_t = pl.pallas_call(
        _make_kernel(B),
        out_shape=jax.ShapeDtypeStruct((F, B), jnp.float32),
        in_specs=[vmem_full] * (1 + len(params)),
        out_specs=vmem_full,
        compiler_params=pltpu.CompilerParams(vmem_limit_bytes=int(budget)),
    )(xt, *params)
    return jnp.transpose(out_t)                                           # (B, F) f32


def init_params(key, n_features, hidden_neurons=(64, 32), output_dim=32):
    """PyTorch-Linear-style init (uniform with bound 1/sqrt(fan_in)).

    Weights are kept in the native (out_features, in_features) layout and stored
    bf16 so the MXU runs native bf16 and weight DMA bytes are halved."""
    dims = []
    in_f = n_features
    for h in hidden_neurons:                       # encoder
        dims.append((h, in_f))
        in_f = h
    dims.append((output_dim, hidden_neurons[-1]))  # bottleneck
    in_f = output_dim
    for h in hidden_neurons[::-1]:                 # decoder hidden
        dims.append((h, in_f))
        in_f = h
    dims.append((n_features, hidden_neurons[0]))   # decoder out

    keys = jax.random.split(key, len(dims))
    params = []
    for k, (fan_out, fan_in) in zip(keys, dims):
        bound = 1.0 / jnp.sqrt(float(fan_in))
        w = jax.random.uniform(
            k, (fan_out, fan_in), dtype=jnp.float32, minval=-bound, maxval=bound
        )
        params.append(w.astype(jnp.bfloat16))
    return tuple(params)


def reference_forward(x, params):
    """Pure-JAX reference with matching numerics (bf16 MXU operands, f32 BN/ReLU)."""
    w_e1, w_e2, w_b, w_d1, w_d2, w_d3 = params

    def mm(h, w):  # h: (B, in) f32/bf16, w: (out, in) bf16
        return jnp.dot(h.astype(jnp.bfloat16), jnp.transpose(w),
                       preferred_element_type=jnp.float32)

    def bn(h):
        mean = jnp.mean(h, axis=0, keepdims=True)
        d = h - mean
        var = jnp.mean(d * d, axis=0, keepdims=True)
        return d * jax.lax.rsqrt(var + EPS)

    relu = lambda h: jnp.maximum(h, 0.0)

    h = relu(bn(mm(x, w_e1)))
    h = relu(bn(mm(h, w_e2)))
    h = relu(mm(h, w_b))
    h = relu(bn(mm(h, w_d1)))
    h = relu(bn(mm(h, w_d2)))
    return mm(h, w_d3)


if __name__ == "__main__":
    # Small deterministic example.  B is a multiple of 128 so the feature-major
    # layout keeps all elementwise work and the output store lane-dense; B > 1
    # is required for training-mode BatchNorm batch statistics.
    B, F = 256, 16
    key = jax.random.PRNGKey(0)
    kx, kp = jax.random.split(key)
    x = jax.random.normal(kx, (B, F), dtype=jnp.float32)
    params = init_params(kp, n_features=F, hidden_neurons=(64, 32), output_dim=32)

    out = autoencoder_forward(x, params)
    out = jax.block_until_ready(out)

    ref = reference_forward(x, params)
    assert out.shape == (B, F)
    assert jnp.allclose(out, ref, atol=3e-2, rtol=3e-2), "mismatch vs reference"

    print("KERNEL_OK")
</pallas_src>

<mosaic_0001>
module attributes {stable_mosaic.version = 11 : i64} {
  func.func @kernel(%arg0: memref<16x256xbf16, #tpu.memory_space<vmem>>, %arg1: memref<64x16xbf16, #tpu.memory_space<vmem>>, %arg2: memref<32x64xbf16, #tpu.memory_space<vmem>>, %arg3: memref<32x32xbf16, #tpu.memory_space<vmem>>, %arg4: memref<32x32xbf16, #tpu.memory_space<vmem>>, %arg5: memref<64x32xbf16, #tpu.memory_space<vmem>>, %arg6: memref<16x64xbf16, #tpu.memory_space<vmem>>, %arg7: memref<16x256xf32, #tpu.memory_space<vmem>>) attributes {dimension_semantics = [], scalar_prefetch = 0 : i64, scratch_operands = 0 : i64, tpu.core_type = #tpu.core_type<tc>} {
    %c0 = arith.constant 0 : index
    %c0_0 = arith.constant 0 : index
    %0 = vector.load %arg0[%c0, %c0_0] : memref<16x256xbf16, #tpu.memory_space<vmem>>, vector<16x256xbf16>
    %c0_1 = arith.constant 0 : index
    %c0_2 = arith.constant 0 : index
    %1 = vector.load %arg1[%c0_1, %c0_2] : memref<64x16xbf16, #tpu.memory_space<vmem>>, vector<64x16xbf16>
    %cst = arith.constant dense<0.000000e+00> : vector<64x256xf32>
    %2 = tpu.matmul %1, %0, %cst {dimension_numbers = #tpu.dot_dimension_numbers<[1], [0], [0], [1], [0, 0, 1, 1], [], []>} : vector<64x16xbf16>, vector<16x256xbf16>, vector<64x256xf32> -> vector<64x256xf32>
    %cst_3 = arith.constant dense<0.000000e+00> : vector<64xf32>
    %3 = vector.multi_reduction <add>, %2, %cst_3 [1] : vector<64x256xf32> to vector<64xf32>
    %4 = vector.shape_cast %3 : vector<64xf32> to vector<64x1xf32>
    %cst_4 = arith.constant 3.906250e-03 : f32
    %5 = vector.broadcast %cst_4 : f32 to vector<64x1xf32>
    %6 = arith.mulf %4, %5 : vector<64x1xf32>
    %7 = vector.broadcast %6 : vector<64x1xf32> to vector<64x256xf32>
    %8 = arith.subf %2, %7 : vector<64x256xf32>
    %9 = arith.mulf %8, %8 : vector<64x256xf32>
    %cst_5 = arith.constant dense<0.000000e+00> : vector<64xf32>
    %10 = vector.multi_reduction <add>, %9, %cst_5 [1] : vector<64x256xf32> to vector<64xf32>
    %11 = vector.shape_cast %10 : vector<64xf32> to vector<64x1xf32>
    %cst_6 = arith.constant 3.906250e-03 : f32
    %12 = vector.broadcast %cst_6 : f32 to vector<64x1xf32>
    %13 = arith.mulf %11, %12 : vector<64x1xf32>
    %cst_7 = arith.constant 9.99999974E-6 : f32
    %14 = vector.broadcast %cst_7 : f32 to vector<64x1xf32>
    %15 = arith.addf %13, %14 : vector<64x1xf32>
    %16 = math.rsqrt %15 : vector<64x1xf32>
    %17 = vector.broadcast %16 : vector<64x1xf32> to vector<64x256xf32>
    %18 = arith.mulf %8, %17 : vector<64x256xf32>
    %cst_8 = arith.constant 0.000000e+00 : f32
    %19 = vector.broadcast %cst_8 : f32 to vector<64x256xf32>
    %20 = arith.maximumf %18, %19 : vector<64x256xf32>
    %21 = arith.truncf %20 : vector<64x256xf32> to vector<64x256xbf16>
    %c0_9 = arith.constant 0 : index
    %c0_10 = arith.constant 0 : index
    %22 = vector.load %arg2[%c0_9, %c0_10] : memref<32x64xbf16, #tpu.memory_space<vmem>>, vector<32x64xbf16>
    %cst_11 = arith.constant dense<0.000000e+00> : vector<32x256xf32>
    %23 = tpu.matmul %22, %21, %cst_11 {dimension_numbers = #tpu.dot_dimension_numbers<[1], [0], [0], [1], [0, 0, 1, 1], [], []>} : vector<32x64xbf16>, vector<64x256xbf16>, vector<32x256xf32> -> vector<32x256xf32>
    %cst_12 = arith.constant dense<0.000000e+00> : vector<32xf32>
    %24 = vector.multi_reduction <add>, %23, %cst_12 [1] : vector<32x256xf32> to vector<32xf32>
    %25 = vector.shape_cast %24 : vector<32xf32> to vector<32x1xf32>
    %cst_13 = arith.constant 3.906250e-03 : f32
    %26 = vector.broadcast %cst_13 : f32 to vector<32x1xf32>
    %27 = arith.mulf %25, %26 : vector<32x1xf32>
    %28 = vector.broadcast %27 : vector<32x1xf32> to vector<32x256xf32>
    %29 = arith.subf %23, %28 : vector<32x256xf32>
    %30 = arith.mulf %29, %29 : vector<32x256xf32>
    %cst_14 = arith.constant dense<0.000000e+00> : vector<32xf32>
    %31 = vector.multi_reduction <add>, %30, %cst_14 [1] : vector<32x256xf32> to vector<32xf32>
    %32 = vector.shape_cast %31 : vector<32xf32> to vector<32x1xf32>
    %cst_15 = arith.constant 3.906250e-03 : f32
    %33 = vector.broadcast %cst_15 : f32 to vector<32x1xf32>
    %34 = arith.mulf %32, %33 : vector<32x1xf32>
    %cst_16 = arith.constant 9.99999974E-6 : f32
    %35 = vector.broadcast %cst_16 : f32 to vector<32x1xf32>
    %36 = arith.addf %34, %35 : vector<32x1xf32>
    %37 = math.rsqrt %36 : vector<32x1xf32>
    %38 = vector.broadcast %37 : vector<32x1xf32> to vector<32x256xf32>
    %39 = arith.mulf %29, %38 : vector<32x256xf32>
    %cst_17 = arith.constant 0.000000e+00 : f32
    %40 = vector.broadcast %cst_17 : f32 to vector<32x256xf32>
    %41 = arith.maximumf %39, %40 : vector<32x256xf32>
    %42 = arith.truncf %41 : vector<32x256xf32> to vector<32x256xbf16>
    %c0_18 = arith.constant 0 : index
    %c0_19 = arith.constant 0 : index
    %43 = vector.load %arg3[%c0_18, %c0_19] : memref<32x32xbf16, #tpu.memory_space<vmem>>, vector<32x32xbf16>
    %cst_20 = arith.constant dense<0.000000e+00> : vector<32x256xf32>
    %44 = tpu.matmul %43, %42, %cst_20 {dimension_numbers = #tpu.dot_dimension_numbers<[1], [0], [0], [1], [0, 0, 1, 1], [], []>} : vector<32x32xbf16>, vector<32x256xbf16>, vector<32x256xf32> -> vector<32x256xf32>
    %cst_21 = arith.constant 0.000000e+00 : f32
    %45 = vector.broadcast %cst_21 : f32 to vector<32x256xf32>
    %46 = arith.maximumf %44, %45 : vector<32x256xf32>
    %47 = arith.truncf %46 : vector<32x256xf32> to vector<32x256xbf16>
    %c0_22 = arith.constant 0 : index
    %c0_23 = arith.constant 0 : index
    %48 = vector.load %arg4[%c0_22, %c0_23] : memref<32x32xbf16, #tpu.memory_space<vmem>>, vector<32x32xbf16>
    %cst_24 = arith.constant dense<0.000000e+00> : vector<32x256xf32>
    %49 = tpu.matmul %48, %47, %cst_24 {dimension_numbers = #tpu.dot_dimension_numbers<[1], [0], [0], [1], [0, 0, 1, 1], [], []>} : vector<32x32xbf16>, vector<32x256xbf16>, vector<32x256xf32> -> vector<32x256xf32>
    %cst_25 = arith.constant dense<0.000000e+00> : vector<32xf32>
    %50 = vector.multi_reduction <add>, %49, %cst_25 [1] : vector<32x256xf32> to vector<32xf32>
    %51 = vector.shape_cast %50 : vector<32xf32> to vector<32x1xf32>
    %cst_26 = arith.constant 3.906250e-03 : f32
    %52 = vector.broadcast %cst_26 : f32 to vector<32x1xf32>
    %53 = arith.mulf %51, %52 : vector<32x1xf32>
    %54 = vector.broadcast %53 : vector<32x1xf32> to vector<32x256xf32>
    %55 = arith.subf %49, %54 : vector<32x256xf32>
    %56 = arith.mulf %55, %55 : vector<32x256xf32>
    %cst_27 = arith.constant dense<0.000000e+00> : vector<32xf32>
    %57 = vector.multi_reduction <add>, %56, %cst_27 [1] : vector<32x256xf32> to vector<32xf32>
    %58 = vector.shape_cast %57 : vector<32xf32> to vector<32x1xf32>
    %cst_28 = arith.constant 3.906250e-03 : f32
    %59 = vector.broadcast %cst_28 : f32 to vector<32x1xf32>
    %60 = arith.mulf %58, %59 : vector<32x1xf32>
    %cst_29 = arith.constant 9.99999974E-6 : f32
    %61 = vector.broadcast %cst_29 : f32 to vector<32x1xf32>
    %62 = arith.addf %60, %61 : vector<32x1xf32>
    %63 = math.rsqrt %62 : vector<32x1xf32>
    %64 = vector.broadcast %63 : vector<32x1xf32> to vector<32x256xf32>
    %65 = arith.mulf %55, %64 : vector<32x256xf32>
    %cst_30 = arith.constant 0.000000e+00 : f32
    %66 = vector.broadcast %cst_30 : f32 to vector<32x256xf32>
    %67 = arith.maximumf %65, %66 : vector<32x256xf32>
    %68 = arith.truncf %67 : vector<32x256xf32> to vector<32x256xbf16>
    %c0_31 = arith.constant 0 : index
    %c0_32 = arith.constant 0 : index
    %69 = vector.load %arg5[%c0_31, %c0_32] : memref<64x32xbf16, #tpu.memory_space<vmem>>, vector<64x32xbf16>
    %cst_33 = arith.constant dense<0.000000e+00> : vector<64x256xf32>
    %70 = tpu.matmul %69, %68, %cst_33 {dimension_numbers = #tpu.dot_dimension_numbers<[1], [0], [0], [1], [0, 0, 1, 1], [], []>} : vector<64x32xbf16>, vector<32x256xbf16>, vector<64x256xf32> -> vector<64x256xf32>
    %cst_34 = arith.constant dense<0.000000e+00> : vector<64xf32>
    %71 = vector.multi_reduction <add>, %70, %cst_34 [1] : vector<64x256xf32> to vector<64xf32>
    %72 = vector.shape_cast %71 : vector<64xf32> to vector<64x1xf32>
    %cst_35 = arith.constant 3.906250e-03 : f32
    %73 = vector.broadcast %cst_35 : f32 to vector<64x1xf32>
    %74 = arith.mulf %72, %73 : vector<64x1xf32>
    %75 = vector.broadcast %74 : vector<64x1xf32> to vector<64x256xf32>
    %76 = arith.subf %70, %75 : vector<64x256xf32>
    %77 = arith.mulf %76, %76 : vector<64x256xf32>
    %cst_36 = arith.constant dense<0.000000e+00> : vector<64xf32>
    %78 = vector.multi_reduction <add>, %77, %cst_36 [1] : vector<64x256xf32> to vector<64xf32>
    %79 = vector.shape_cast %78 : vector<64xf32> to vector<64x1xf32>
    %cst_37 = arith.constant 3.906250e-03 : f32
    %80 = vector.broadcast %cst_37 : f32 to vector<64x1xf32>
    %81 = arith.mulf %79, %80 : vector<64x1xf32>
    %cst_38 = arith.constant 9.99999974E-6 : f32
    %82 = vector.broadcast %cst_38 : f32 to vector<64x1xf32>
    %83 = arith.addf %81, %82 : vector<64x1xf32>
    %84 = math.rsqrt %83 : vector<64x1xf32>
    %85 = vector.broadcast %84 : vector<64x1xf32> to vector<64x256xf32>
    %86 = arith.mulf %76, %85 : vector<64x256xf32>
    %cst_39 = arith.constant 0.000000e+00 : f32
    %87 = vector.broadcast %cst_39 : f32 to vector<64x256xf32>
    %88 = arith.maximumf %86, %87 : vector<64x256xf32>
    %89 = arith.truncf %88 : vector<64x256xf32> to vector<64x256xbf16>
    %c0_40 = arith.constant 0 : index
    %c0_41 = arith.constant 0 : index
    %90 = vector.load %arg6[%c0_40, %c0_41] : memref<16x64xbf16, #tpu.memory_space<vmem>>, vector<16x64xbf16>
    %cst_42 = arith.constant dense<0.000000e+00> : vector<16x256xf32>
    %91 = tpu.matmul %90, %89, %cst_42 {dimension_numbers = #tpu.dot_dimension_numbers<[1], [0], [0], [1], [0, 0, 1, 1], [], []>} : vector<16x64xbf16>, vector<64x256xbf16>, vector<16x256xf32> -> vector<16x256xf32>
    %c0_43 = arith.constant 0 : index
    %c0_44 = arith.constant 0 : index
    %92 = vector.load %arg7[%c0_43, %c0_44] : memref<16x256xf32, #tpu.memory_space<vmem>>, vector<16x256xf32>
    tpu.vector_store %arg7[%c0_43, %c0_44], %91 {strides = array<i32>} : memref<16x256xf32, #tpu.memory_space<vmem>>, vector<16x256xf32>,
    return
  }
}

</mosaic_0001>

<bundles_post_ra>
// kernel: tpu_custom_call.1
= control target key start
LH: loop header
LB: loop body
LE: loop exit
PB: predicated region body
PF: predicated region fallthrough
CT: control target
= control target key end

     0   :  { %v1163_v2 = vmov 0   ;;  %vm68_vm0 = vcmask 130048   ;;  %s1456_s0 = inlined_call_operand.vmem [shape: bf16[16,256], index: 0, kind: input, shape index: {}]   ;;  %s1457_s1 = inlined_call_operand.vmem [shape: bf16[64,16], index: 1, kind: input, shape index: {}]   ;;  %s1458_s2 = inlined_call_operand.vmem [shape: bf16[32,64], index: 2, kind: input, shape index: {}]   ;;  %s1459_s3 = inlined_call_operand.vmem [shape: bf16[32,32], index: 3, kind: input, shape index: {}]   ;;  %s1460_s4 = inlined_call_operand.vmem [shape: bf16[32,32], index: 4, kind: input, shape index: {}]   ;;  %s1461_s5 = inlined_call_operand.vmem [shape: bf16[64,32], index: 5, kind: input, shape index: {}]   ;;  %s1462_s6 = inlined_call_operand.vmem [shape: bf16[16,64], index: 6, kind: input, shape index: {}]   ;;  %s1463_s7 = inlined_call_operand.hbm [shape: f32[16,256], index: 7, kind: output, shape index: {}]  }
   0x1   :  { %v1073_v0 = vld [vmem:[%s1456_s0 + $0x4] ss:$8 sps:$4 sm:$0xff]   ;;  %v1075_v1 = vld [vmem:[%s1456_s0] ss:$8 sps:$4 sm:$0xff]   ;;  %113 = vmatprep.mubr.bf16.mxu0 %v1163_v2  ;;  %369 = vmatprep.mubr.bf16.mxu1 %v1163_v2 }
   0x2   :  { %81 = vmatprep.subr.bf16.mxu0 %v1073_v0  ;;  %v1076_v3 = vld [vmem:[%s1457_s1] sm:$0xff]   ;;  %v1077_v4 = vld [vmem:[%s1457_s1 + $0x8] sm:$0xff]  }
   0x3   :  { %82 = vmatpush1.bf16.msra.mxu0 %v1075_v1 }
   0x6   :  { %1035 = vmatmul.mubr.msk.bf16.vlgmr.msra.gmra.mrb[0].mxu0 %vm68_vm0, %v1076_v3 }
   0x7   :  { %123 = vmatprep.mubr.bf16.mxu0 %v1163_v2 }
   0x8   :  { %12 = vsyncpa [#allocation3], 0  ;;  %v1078_v5 = vld [vmem:[%s1457_s1 + $0x10] sm:$0xff]   ;;  %v1079_v6 = vld [vmem:[%s1457_s1 + $0x18] sm:$0xff]   ;;  %vm320_vm1 = vcmask 523264   ;;  %vm470_vm2 = vcmask 261120  }
   0x9   :  { %s1164_s29 = smov [#allocation2]  }
   0xa   :  { %s1018_s30 = sshll.u32 %s1164_s29, 4  ;;  %s1019_s30 = int_to_ptr.vmem [resolvable:$true] %s1018_s30 }
   0xb   :  { %s1139_s8 = scalar_lea.vmem %s1019_s30, 512  ;;  %p1144_p1 = scmp.lt.s32.totalorder %s1019_s30, %s1019_s30 }
   0xc   :  { %p1140_p0 = scmp.ne.s32.totalorder %s1019_s30, %s1139_s8  ;;  %p1145_p2 = scmp.lt.s32.totalorder %s1139_s8, %s1139_s8 }
   0xe   :  { %1036 = vmatmul.mubr.msk.bf16.gmra.mrb[4].mxu0 %vm68_vm0, %v1077_v4  ;;  %p1146_p3 = por %p1145_p2, %p1144_p1 }
   0xf   :  { %133 = vmatprep.mubr.bf16.mxu0 %v1163_v2 }
  0x10   :  { %p1147_p4 = pnand %p1146_p3, %p1140_p0 }
  0x16   :  { %1037 = vmatmul.mubr.msk.bf16.gmra.mrb[8].mxu0 %vm68_vm0, %v1078_v5 }
  0x17   :  { %143 = vmatprep.mubr.bf16.mxu0 %v1163_v2 }
  0x1e   :  { %1038 = vmatmul.mubr.msk.bf16.gmra.mrb[12].mxu0 %vm68_vm0, %v1079_v6 }
  0x1f   :  { %359 = vmatprep.mubr.bf16.mxu0 %v1163_v2 }
  0xd9   :  { %v115_v7 = vpop.f32.mrb[0].mxu0 }
  0xda   :  { %v117_v8 = vpop.f32.mrb[1].mxu0 }
  0xdb   :  { %v119_v9 = vpop.f32.mrb[2].mxu0  ;;  %v154_v10 = vadd.f32 %v117_v8, %v115_v7 }
  0xdc   :  { %v121_v11 = vpop.f32.mrb[3].mxu0 }
  0xdd   :  { %155 = vadd.xlane.f32.xlu0 %v154_v10  ;;  %v157_v12 = vadd.f32 %v121_v11, %v119_v9 }
  0xe1   :  { %158 = vadd.xlane.f32.xlu0 %v157_v12  ;;  %v125_v13 = vpop.f32.mrb[4].mxu0 }
  0xe2   :  { %v127_v14 = vpop.f32.mrb[5].mxu0 }
  0xe3   :  { %v129_v15 = vpop.f32.mrb[6].mxu0  ;;  %v160_v16 = vadd.f32 %v127_v14, %v125_v13 }
  0xe4   :  { %v131_v17 = vpop.f32.mrb[7].mxu0 }
  0xe5   :  { %161 = vadd.xlane.f32.xlu1 %v160_v16  ;;  %v163_v18 = vadd.f32 %v131_v17, %v129_v15 }
  0xe9   :  { %164 = vadd.xlane.f32.xlu1 %v163_v18  ;;  %v135_v19 = vpop.f32.mrb[8].mxu0 }
  0xea   :  { %v137_v20 = vpop.f32.mrb[9].mxu0 }
  0xeb   :  { %v139_v21 = vpop.f32.mrb[10].mxu0  ;;  %v166_v22 = vadd.f32 %v137_v20, %v135_v19 }
  0xec   :  { %v141_v23 = vpop.f32.mrb[11].mxu0 }
  0xed   :  { %167 = vadd.xlane.f32.xlu0 %v166_v22  ;;  %v169_v24 = vadd.f32 %v141_v23, %v139_v21 }
  0xef   :  { %170 = vadd.xlane.f32.xlu1 %v169_v24 }
  0xf1   :  { %v145_v25 = vpop.f32.mrb[12].mxu0 }
  0xf2   :  { %v147_v26 = vpop.f32.mrb[13].mxu0 }
  0xf3   :  { %v149_v27 = vpop.f32.mrb[14].mxu0  ;;  %v172_v28 = vadd.f32 %v147_v26, %v145_v25 }
  0xf4   :  { %v151_v29 = vpop.f32.mrb[15].mxu0 }
  0xf5   :  { %173 = vadd.xlane.f32.xlu0 %v172_v28  ;;  %v175_v30 = vadd.f32 %v151_v29, %v149_v27 }
  0xf7   :  { %176 = vadd.xlane.f32.xlu1 %v175_v30 }
 0x16a   :  { %v156_v31 = vpop.xlane.xlu0 %155 }
 0x16b   :  { %v178_v32 = vmul.f32 0.00390625, %v156_v31 }
 0x16d   :  { %v1231_v33 = vsub.f32 %v115_v7, %v178_v32  ;;  %v1233_v34 = vsub.f32 %v117_v8, %v178_v32 }
 0x16e   :  { %v159_v35 = vpop.xlane.xlu0 %158 }
 0x16f   :  { %v179_v36 = vmul.f32 0.00390625, %v159_v35  ;;  %v202_v37 = vmul.f32 %v1231_v33, %v1231_v33  ;;  %v203_v38 = vmul.f32 %v1233_v34, %v1233_v34 }
 0x171   :  { %v1239_v39 = vsub.f32 %v119_v9, %v179_v36  ;;  %v1241_v40 = vsub.f32 %v121_v11, %v179_v36  ;;  %v218_v41 = vadd.f32 %v203_v38, %v202_v37 }
 0x172   :  { %v162_v42 = vpop.xlane.xlu1 %161 }
 0x173   :  { %v180_v43 = vmul.f32 0.00390625, %v162_v42  ;;  %219 = vadd.xlane.f32.xlu0 %v218_v41  ;;  %v204_v44 = vmul.f32 %v1239_v39, %v1239_v39  ;;  %v205_v45 = vmul.f32 %v1241_v40, %v1241_v40 }
 0x175   :  { %v1247_v46 = vsub.f32 %v125_v13, %v180_v43  ;;  %v1249_v47 = vsub.f32 %v127_v14, %v180_v43  ;;  %v221_v48 = vadd.f32 %v205_v45, %v204_v44 }
 0x176   :  { %v165_v49 = vpop.xlane.xlu1 %164 }
 0x177   :  { %v181_v50 = vmul.f32 0.00390625, %v165_v49  ;;  %222 = vadd.xlane.f32.xlu1 %v221_v48  ;;  %v206_v51 = vmul.f32 %v1247_v46, %v1247_v46  ;;  %v207_v52 = vmul.f32 %v1249_v47, %v1249_v47 }
 0x179   :  { %v1255_v53 = vsub.f32 %v129_v15, %v181_v50  ;;  %v1257_v54 = vsub.f32 %v131_v17, %v181_v50  ;;  %v224_v55 = vadd.f32 %v207_v52, %v206_v51 }
 0x17a   :  { %v168_v56 = vpop.xlane.xlu0 %167 }
 0x17b   :  { %v182_v57 = vmul.f32 0.00390625, %v168_v56  ;;  %225 = vadd.xlane.f32.xlu0 %v224_v55  ;;  %v208_v58 = vmul.f32 %v1255_v53, %v1255_v53  ;;  %v209_v59 = vmul.f32 %v1257_v54, %v1257_v54 }
 0x17c   :  { %v171_v60 = vpop.xlane.xlu1 %170 }
 0x17d   :  { %v1263_v61 = vsub.f32 %v135_v19, %v182_v57  ;;  %v1265_v62 = vsub.f32 %v137_v20, %v182_v57  ;;  %v183_v63 = vmul.f32 0.00390625, %v171_v60  ;;  %v227_v0 = vadd.f32 %v209_v59, %v208_v58 }
 0x17f   :  { %v1267_v1 = vsub.f32 %v139_v21, %v183_v63  ;;  %v1269_v3 = vsub.f32 %v141_v23, %v183_v63  ;;  %228 = vadd.xlane.f32.xlu1 %v227_v0  ;;  %v210_v4 = vmul.f32 %v1263_v61, %v1263_v61  ;;  %v211_v5 = vmul.f32 %v1265_v62, %v1265_v62 }
 0x181   :  { %v230_v6 = vadd.f32 %v211_v5, %v210_v4  ;;  %v212_v7 = vmul.f32 %v1267_v1, %v1267_v1  ;;  %v213_v8 = vmul.f32 %v1269_v3, %v1269_v3 }
 0x182   :  { %v174_v9 = vpop.xlane.xlu0 %173 }
 0x183   :  { %v184_v10 = vmul.f32 0.00390625, %v174_v9  ;;  %231 = vadd.xlane.f32.xlu0 %v230_v6  ;;  %v233_v11 = vadd.f32 %v213_v8, %v212_v7 }
 0x184   :  { %v177_v12 = vpop.xlane.xlu1 %176 }
 0x185   :  { %v1279_v13 = vsub.f32 %v145_v25, %v184_v10  ;;  %v1281_v14 = vsub.f32 %v147_v26, %v184_v10  ;;  %v185_v15 = vmul.f32 0.00390625, %v177_v12  ;;  %234 = vadd.xlane.f32.xlu1 %v233_v11 }
 0x187   :  { %v1283_v16 = vsub.f32 %v149_v27, %v185_v15  ;;  %v1285_v17 = vsub.f32 %v151_v29, %v185_v15  ;;  %v214_v18 = vmul.f32 %v1279_v13, %v1279_v13  ;;  %v215_v19 = vmul.f32 %v1281_v14, %v1281_v14 }
 0x189   :  { %v236_v20 = vadd.f32 %v215_v19, %v214_v18  ;;  %v216_v21 = vmul.f32 %v1283_v16, %v1283_v16  ;;  %v217_v22 = vmul.f32 %v1285_v17, %v1285_v17 }
 0x18b   :  { %237 = vadd.xlane.f32.xlu0 %v236_v20  ;;  %v239_v23 = vadd.f32 %v217_v22, %v216_v21 }
 0x18d   :  { %240 = vadd.xlane.f32.xlu1 %v239_v23 }
 0x200   :  { %v220_v24 = vpop.xlane.xlu0 %219 }
 0x201   :  { %v242_v25 = vmul.f32 0.00390625, %v220_v24 }
 0x203   :  { %v250_v26 = vadd.f32 1e-05, %v242_v25 }
 0x204   :  { %v223_v27 = vpop.xlane.xlu1 %222 }
 0x205   :  { %1091 = vrsqrt.f32 %v250_v26  ;;  %v243_v28 = vmul.f32 0.00390625, %v223_v27 }
 0x207   :  { %v251_v29 = vadd.f32 1e-05, %v243_v28 }
 0x208   :  { %v226_v30 = vpop.xlane.xlu0 %225 }
 0x209   :  { %1093 = vrsqrt.f32 %v251_v29  ;;  %v244_v31 = vmul.f32 0.00390625, %v226_v30 }
 0x20b   :  { %v252_v32 = vadd.f32 1e-05, %v244_v31 }
 0x20c   :  { %v229_v35 = vpop.xlane.xlu1 %228 }
 0x20d   :  { %1095 = vrsqrt.f32 %v252_v32  ;;  %v245_v36 = vmul.f32 0.00390625, %v229_v35 }
 0x20f   :  { %v1092_v37 = vpop.eup %1091  ;;  %v253_v38 = vadd.f32 1e-05, %v245_v36 }
 0x210   :  { %v232_v41 = vpop.xlane.xlu0 %231  ;;  %v267_v44 = vmul.f32 %v1092_v37, %v1233_v34  ;;  %v266_v45 = vmul.f32 %v1092_v37, %v1231_v33 }
 0x211   :  { %1097 = vrsqrt.f32 %v253_v38  ;;  %v246_v42 = vmul.f32 0.00390625, %v232_v41 }
 0x212   :  { %v235_v43 = vpop.xlane.xlu1 %234  ;;  %v283_v56 = vmax.f32 %v267_v44, 0.0  ;;  %v282_v58 = vmax.f32 %v266_v45, 0.0 }
 0x213   :  { %v1094_v48 = vpop.eup %1093  ;;  %v254_v49 = vadd.f32 1e-05, %v246_v42  ;;  %v247_v50 = vmul.f32 0.00390625, %v235_v43 }
 0x214   :  { %v269_v51 = vmul.f32 %v1094_v48, %v1241_v40  ;;  %v268_v52 = vmul.f32 %v1094_v48, %v1239_v39 }
 0x215   :  { %1099 = vrsqrt.f32 %v254_v49  ;;  %v255_v55 = vadd.f32 1e-05, %v247_v50 }
 0x216   :  { %v285_v57 = vmax.f32 %v269_v51, 0.0  ;;  %v284_v59 = vmax.f32 %v268_v52, 0.0 }
 0x217   :  { %v1096_v60 = vpop.eup %1095  ;;  %1101 = vrsqrt.f32 %v255_v55 }
 0x218   :  { %v238_v63 = vpop.xlane.xlu0 %237  ;;  %v299_v0 = vpack.c.bf16 %v285_v57, %v283_v56  ;;  %v298_v34 = vpack.c.bf16 %v284_v59, %v282_v58  ;;  %v271_v5 = vmul.f32 %v1096_v60, %v1249_v47  ;;  %v270_v40 = vmul.f32 %v1096_v60, %v1247_v46 }
 0x219   :  { %v248_v4 = vmul.f32 0.00390625, %v238_v63 }
 0x21a   :  { %327 = vmatprep.subr.bf16.mxu0 %v299_v0  ;;  %1061 = vmatprep.subr.bf16.mxu1 %v299_v0  ;;  %v241_v33 = vpop.xlane.xlu1 %240  ;;  %v287_v11 = vmax.f32 %v271_v5, 0.0  ;;  %v286_v15 = vmax.f32 %v270_v40, 0.0 }
 0x21b   :  { %v1098_v39 = vpop.eup %1097  ;;  %v256_v6 = vadd.f32 1e-05, %v248_v4  ;;  %v249_v7 = vmul.f32 0.00390625, %v241_v33  ;;  %328 = vmatpush1.bf16.msra.mxu0 %v298_v34  ;;  %1065 = vmatpush1.bf16.msra.mxu1 %v298_v34 }
 0x21c   :  { %v273_v8 = vmul.f32 %v1098_v39, %v1257_v54  ;;  %v272_v9 = vmul.f32 %v1098_v39, %v1255_v53 }
 0x21d   :  { %1103 = vrsqrt.f32 %v256_v6  ;;  %v257_v10 = vadd.f32 1e-05, %v249_v7 }
 0x21e   :  { %v289_v12 = vmax.f32 %v273_v8, 0.0  ;;  %v288_v18 = vmax.f32 %v272_v9, 0.0 }
 0x21f   :  { %v1100_v19 = vpop.eup %1099  ;;  %1105 = vrsqrt.f32 %v257_v10 }
 0x220   :  { %v301_v47 = vpack.c.bf16 %v289_v12, %v287_v11  ;;  %v300_v20 = vpack.c.bf16 %v288_v18, %v286_v15  ;;  %v275_v46 = vmul.f32 %v1100_v19, %v1265_v62  ;;  %v274_v21 = vmul.f32 %v1100_v19, %v1263_v61 }
 0x221   :  { %v1102_v22 = vpop.eup %1101 }
 0x222   :  { %329 = vmatprep.subr.bf16.mxu0 %v301_v47  ;;  %1062 = vmatprep.subr.bf16.mxu1 %v301_v47  ;;  %v277_v54 = vmul.f32 %v1102_v22, %v1269_v3  ;;  %v276_v53 = vmul.f32 %v1102_v22, %v1267_v1  ;;  %v291_v23 = vmax.f32 %v275_v46, 0.0  ;;  %v290_v25 = vmax.f32 %v274_v21, 0.0 }
 0x223   :  { %330 = vmatpush1.bf16.msra.mxu0 %v300_v20  ;;  %1066 = vmatpush1.bf16.msra.mxu1 %v300_v20 }
 0x224   :  { %v293_v24 = vmax.f32 %v277_v54, 0.0  ;;  %v292_v26 = vmax.f32 %v276_v53, 0.0 }
 0x226   :  { %v303_v27 = vpack.c.bf16 %v293_v24, %v291_v23  ;;  %v302_v28 = vpack.c.bf16 %v292_v26, %v290_v25 }
 0x227   :  { %v1104_v29 = vpop.eup %1103 }
 0x228   :  { %331 = vmatprep.subr.bf16.mxu0 %v303_v27  ;;  %1063 = vmatprep.subr.bf16.mxu1 %v303_v27  ;;  %v279_v61 = vmul.f32 %v1104_v29, %v1281_v14  ;;  %v278_v62 = vmul.f32 %v1104_v29, %v1279_v13  ;;  %v1080_v14 = vld [vmem:[%s1458_s2] sm:$0xff]   ;;  %v1081_v13 = vld [vmem:[%s1458_s2 + $0x8] sm:$0xff]  }
 0x229   :  { %v1106_v30 = vpop.eup %1105  ;;  %332 = vmatpush1.bf16.msra.mxu0 %v302_v28  ;;  %1067 = vmatpush1.bf16.msra.mxu1 %v302_v28 }
 0x22a   :  { %v281_v1 = vmul.f32 %v1106_v30, %v1285_v17  ;;  %v280_v3 = vmul.f32 %v1106_v30, %v1283_v16  ;;  %v295_v31 = vmax.f32 %v279_v61, 0.0  ;;  %v294_v35 = vmax.f32 %v278_v62, 0.0 }
 0x22c   :  { %v297_v32 = vmax.f32 %v281_v1, 0.0  ;;  %v296_v36 = vmax.f32 %v280_v3, 0.0 }
 0x22e   :  { %v305_v37 = vpack.c.bf16 %v297_v32, %v295_v31  ;;  %v304_v38 = vpack.c.bf16 %v296_v36, %v294_v35 }
 0x230   :  { %333 = vmatprep.subr.bf16.mxu0 %v305_v37  ;;  %1064 = vmatprep.subr.bf16.mxu1 %v305_v37 }
 0x231   :  { %334 = vmatpush1.bf16.msra.mxu0 %v304_v38  ;;  %1068 = vmatpush1.bf16.msra.mxu1 %v304_v38 }
 0x234   :  { %1041 = vmatmul.mubr.msk.bf16.vlgmr.msra.gmra.mrb[16].mxu0 %vm320_vm1, %v1080_v14  ;;  %1042 = vmatmul.mubr.msk.bf16.vlgmr.msra.gmra.mrb[0].mxu1 %vm320_vm1, %v1081_v13 }
 0x235   :  { %509 = vmatprep.mubr.bf16.mxu1 %v1163_v2  ;;  %594 = vmatprep.mubr.bf16.mxu0 %v1163_v2 }
 0x307   :  { %v361_v16 = vpop.f32.mrb[16].mxu0  ;;  %v371_v17 = vpop.f32.mrb[0].mxu1 }
 0x308   :  { %v363_v41 = vpop.f32.mrb[17].mxu0  ;;  %v373_v42 = vpop.f32.mrb[1].mxu1 }
 0x309   :  { %v365_v43 = vpop.f32.mrb[18].mxu0  ;;  %v380_v44 = vadd.f32 %v363_v41, %v361_v16  ;;  %v375_v45 = vpop.f32.mrb[2].mxu1  ;;  %v386_v48 = vadd.f32 %v373_v42, %v371_v17 }
 0x30a   :  { %v367_v49 = vpop.f32.mrb[19].mxu0  ;;  %v377_v50 = vpop.f32.mrb[3].mxu1 }
 0x30b   :  { %381 = vadd.xlane.f32.xlu0 %v380_v44  ;;  %v383_v51 = vadd.f32 %v367_v49, %v365_v43  ;;  %v389_v52 = vadd.f32 %v377_v50, %v375_v45 }
 0x30d   :  { %384 = vadd.xlane.f32.xlu1 %v383_v51 }
 0x30f   :  { %387 = vadd.xlane.f32.xlu0 %v386_v48 }
 0x311   :  { %390 = vadd.xlane.f32.xlu1 %v389_v52 }
 0x398   :  { %v382_v55 = vpop.xlane.xlu0 %381 }
 0x399   :  { %v392_v56 = vmul.f32 0.00390625, %v382_v55 }
 0x39a   :  { %v385_v57 = vpop.xlane.xlu1 %384 }
 0x39b   :  { %v396_v58 = vsub.f32 %v361_v16, %v392_v56  ;;  %v397_v59 = vsub.f32 %v363_v41, %v392_v56  ;;  %v393_v60 = vmul.f32 0.00390625, %v385_v57  ;;  %v1082_v56 = vld [vmem:[%s1459_s3] sm:$0xff]   ;;  %v1083_v57 = vld [vmem:[%s1459_s3 + $0x8] sm:$0xff]  }
 0x39c   :  { %v388_v63 = vpop.xlane.xlu0 %387 }
 0x39d   :  { %v398_v0 = vsub.f32 %v365_v43, %v393_v60  ;;  %v399_v34 = vsub.f32 %v367_v49, %v393_v60  ;;  %v394_v4 = vmul.f32 0.00390625, %v388_v63  ;;  %v404_v33 = vmul.f32 %v396_v58, %v396_v58 }
 0x39e   :  { %v391_v5 = vpop.xlane.xlu1 %390  ;;  %v405_v40 = vmul.f32 %v397_v59, %v397_v59 }
 0x39f   :  { %v400_v39 = vsub.f32 %v371_v17, %v394_v4  ;;  %v401_v6 = vsub.f32 %v373_v42, %v394_v4  ;;  %v395_v7 = vmul.f32 0.00390625, %v391_v5  ;;  %v406_v8 = vmul.f32 %v398_v0, %v398_v0 }
 0x3a0   :  { %v412_v9 = vadd.f32 %v405_v40, %v404_v33  ;;  %v407_v10 = vmul.f32 %v399_v34, %v399_v34 }
 0x3a1   :  { %v402_v11 = vsub.f32 %v375_v45, %v395_v7  ;;  %v403_v12 = vsub.f32 %v377_v50, %v395_v7  ;;  %v408_v15 = vmul.f32 %v400_v39, %v400_v39  ;;  %v409_v18 = vmul.f32 %v401_v6, %v401_v6 }
 0x3a2   :  { %413 = vadd.xlane.f32.xlu0 %v412_v9  ;;  %v415_v19 = vadd.f32 %v407_v10, %v406_v8 }
 0x3a3   :  { %v418_v47 = vadd.f32 %v409_v18, %v408_v15  ;;  %v410_v20 = vmul.f32 %v402_v11, %v402_v11  ;;  %v411_v46 = vmul.f32 %v403_v12, %v403_v12 }
 0x3a4   :  { %416 = vadd.xlane.f32.xlu1 %v415_v19  ;;  %v1084_v19 = vld [vmem:[%s1460_s4] sm:$0xff]  }
 0x3a5   :  { %v421_v21 = vadd.f32 %v411_v46, %v410_v20 }
 0x3a6   :  { %419 = vadd.xlane.f32.xlu0 %v418_v47  ;;  %v1085_v47 = vld [vmem:[%s1460_s4 + $0x8] sm:$0xff]  }
 0x3a8   :  { %422 = vadd.xlane.f32.xlu1 %v421_v21 }
 0x42f   :  { %v414_v22 = vpop.xlane.xlu0 %413 }
 0x430   :  { %v424_v54 = vmul.f32 0.00390625, %v414_v22 }
 0x431   :  { %v417_v53 = vpop.xlane.xlu1 %416 }
 0x432   :  { %v428_v23 = vadd.f32 1e-05, %v424_v54  ;;  %v425_v24 = vmul.f32 0.00390625, %v417_v53 }
 0x433   :  { %v420_v25 = vpop.xlane.xlu0 %419 }
 0x434   :  { %1107 = vrsqrt.f32 %v428_v23  ;;  %v429_v26 = vadd.f32 1e-05, %v425_v24  ;;  %v426_v27 = vmul.f32 0.00390625, %v420_v25 }
 0x435   :  { %v423_v28 = vpop.xlane.xlu1 %422 }
 0x436   :  { %1109 = vrsqrt.f32 %v429_v26  ;;  %v430_v29 = vadd.f32 1e-05, %v426_v27  ;;  %v427_v61 = vmul.f32 0.00390625, %v423_v28 }
 0x438   :  { %1111 = vrsqrt.f32 %v430_v29  ;;  %v431_v62 = vadd.f32 1e-05, %v427_v61 }
 0x43a   :  { %1113 = vrsqrt.f32 %v431_v62 }
 0x43e   :  { %v1108_v30 = vpop.eup %1107 }
 0x43f   :  { %v437_v1 = vmul.f32 %v1108_v30, %v397_v59  ;;  %v436_v3 = vmul.f32 %v1108_v30, %v396_v58 }
 0x440   :  { %v1110_v31 = vpop.eup %1109 }
 0x441   :  { %v439_v32 = vmul.f32 %v1110_v31, %v399_v34  ;;  %v438_v35 = vmul.f32 %v1110_v31, %v398_v0  ;;  %v445_v37 = vmax.f32 %v437_v1, 0.0  ;;  %v444_v14 = vmax.f32 %v436_v3, 0.0 }
 0x442   :  { %v1112_v36 = vpop.eup %1111 }
 0x443   :  { %v447_v38 = vmax.f32 %v439_v32, 0.0  ;;  %v446_v13 = vmax.f32 %v438_v35, 0.0  ;;  %v441_v16 = vmul.f32 %v1112_v36, %v401_v6  ;;  %v440_v41 = vmul.f32 %v1112_v36, %v400_v39 }
 0x444   :  { %v1114_v17 = vpop.eup %1113 }
 0x445   :  { %v453_v42 = vpack.c.bf16 %v447_v38, %v445_v37  ;;  %v452_v43 = vpack.c.bf16 %v446_v13, %v444_v14  ;;  %v443_v44 = vmul.f32 %v1114_v17, %v403_v12  ;;  %v442_v45 = vmul.f32 %v1114_v17, %v402_v11 }
 0x446   :  { %v449_v48 = vmax.f32 %v441_v16, 0.0  ;;  %v448_v50 = vmax.f32 %v440_v41, 0.0 }
 0x447   :  { %477 = vmatprep.subr.bf16.mxu1 %v453_v42  ;;  %v451_v49 = vmax.f32 %v443_v44, 0.0  ;;  %v450_v51 = vmax.f32 %v442_v45, 0.0 }
 0x448   :  { %478 = vmatpush1.bf16.msra.mxu1 %v452_v43 }
 0x449   :  { %v455_v52 = vpack.c.bf16 %v451_v49, %v449_v48  ;;  %v454_v55 = vpack.c.bf16 %v450_v51, %v448_v50 }
 0x44b   :  { %479 = vmatprep.subr.bf16.mxu1 %v455_v52 }
 0x44c   :  { %480 = vmatpush1.bf16.msra.mxu1 %v454_v55 }
 0x44f   :  { %1045 = vmatmul.mubr.msk.bf16.vlgmr.msra.gmra.mrb[4].mxu1 %vm470_vm2, %v1082_v56 }
 0x450   :  { %519 = vmatprep.mubr.bf16.mxu1 %v1163_v2 }
 0x457   :  { %1046 = vmatmul.mubr.msk.bf16.gmra.mrb[8].mxu1 %vm470_vm2, %v1083_v57 }
 0x458   :  { %763 = vmatprep.mubr.bf16.mxu1 %v1163_v2 }
 0x522   :  { %v511_v58 = vpop.f32.mrb[4].mxu1 }
 0x523   :  { %v513_v59 = vpop.f32.mrb[5].mxu1  ;;  %v530_v63 = vmax.f32 %v511_v58, 0.0 }
 0x524   :  { %v515_v60 = vpop.f32.mrb[6].mxu1  ;;  %v531_v4 = vmax.f32 %v513_v59, 0.0 }
 0x525   :  { %v532_v0 = vmax.f32 %v515_v60, 0.0  ;;  %v517_v34 = vpop.f32.mrb[7].mxu1 }
 0x526   :  { %v533_v33 = vmax.f32 %v517_v34, 0.0 }
 0x527   :  { %v538_v5 = vpack.c.bf16 %v532_v0, %v530_v63 }
 0x528   :  { %v539_v40 = vpack.c.bf16 %v533_v33, %v531_v4 }
 0x52a   :  { %v521_v39 = vpop.f32.mrb[8].mxu1  ;;  %562 = vmatprep.subr.bf16.mxu0 %v539_v40 }
 0x52b   :  { %v523_v6 = vpop.f32.mrb[9].mxu1  ;;  %563 = vmatpush1.bf16.msra.mxu0 %v538_v5  ;;  %v534_v8 = vmax.f32 %v521_v39, 0.0 }
 0x52c   :  { %v525_v7 = vpop.f32.mrb[10].mxu1  ;;  %v535_v11 = vmax.f32 %v523_v6, 0.0 }
 0x52d   :  { %v536_v9 = vmax.f32 %v525_v7, 0.0  ;;  %v527_v10 = vpop.f32.mrb[11].mxu1 }
 0x52e   :  { %v537_v12 = vmax.f32 %v527_v10, 0.0 }
 0x52f   :  { %v540_v15 = vpack.c.bf16 %v536_v9, %v534_v8 }
 0x530   :  { %v541_v18 = vpack.c.bf16 %v537_v12, %v535_v11 }
 0x532   :  { %564 = vmatprep.subr.bf16.mxu0 %v541_v18 }
 0x533   :  { %565 = vmatpush1.bf16.msra.mxu0 %v540_v15 }
 0x536   :  { %1049 = vmatmul.mubr.msk.bf16.vlgmr.msra.gmra.mrb[20].mxu0 %vm470_vm2, %v1084_v19 }
 0x537   :  { %604 = vmatprep.mubr.bf16.mxu0 %v1163_v2 }
 0x53e   :  { %1050 = vmatmul.mubr.msk.bf16.gmra.mrb[24].mxu0 %vm470_vm2, %v1085_v47 }
 0x53f   :  { %998 = vmatprep.mubr.bf16.mxu0 %v1163_v2 }
 0x609   :  { %v596_v20 = vpop.f32.mrb[20].mxu0 }
 0x60a   :  { %v598_v46 = vpop.f32.mrb[21].mxu0 }
 0x60b   :  { %v600_v21 = vpop.f32.mrb[22].mxu0  ;;  %v615_v22 = vadd.f32 %v598_v46, %v596_v20 }
 0x60c   :  { %v602_v54 = vpop.f32.mrb[23].mxu0 }
 0x60d   :  { %616 = vadd.xlane.f32.xlu0 %v615_v22  ;;  %v618_v53 = vadd.f32 %v602_v54, %v600_v21 }
 0x60f   :  { %619 = vadd.xlane.f32.xlu1 %v618_v53 }
 0x611   :  { %v606_v23 = vpop.f32.mrb[24].mxu0 }
 0x612   :  { %v608_v24 = vpop.f32.mrb[25].mxu0 }
 0x613   :  { %v610_v25 = vpop.f32.mrb[26].mxu0  ;;  %v621_v26 = vadd.f32 %v608_v24, %v606_v23 }
 0x614   :  { %v612_v27 = vpop.f32.mrb[27].mxu0 }
 0x615   :  { %622 = vadd.xlane.f32.xlu0 %v621_v26  ;;  %v624_v28 = vadd.f32 %v612_v27, %v610_v25 }
 0x617   :  { %625 = vadd.xlane.f32.xlu1 %v624_v28 }
 0x69a   :  { %v617_v29 = vpop.xlane.xlu0 %616 }
 0x69b   :  { %v627_v61 = vmul.f32 0.00390625, %v617_v29 }
 0x69c   :  { %v620_v62 = vpop.xlane.xlu1 %619 }
 0x69d   :  { %v631_v30 = vsub.f32 %v596_v20, %v627_v61  ;;  %v632_v1 = vsub.f32 %v598_v46, %v627_v61  ;;  %v628_v3 = vmul.f32 0.00390625, %v620_v62  ;;  %v1086_v61 = vld [vmem:[%s1461_s5] sm:$0xff]   ;;  %v1087_v62 = vld [vmem:[%s1461_s5 + $0x8] sm:$0xff]  }
 0x69f   :  { %v633_v31 = vsub.f32 %v600_v21, %v628_v3  ;;  %v634_v32 = vsub.f32 %v602_v54, %v628_v3  ;;  %v639_v35 = vmul.f32 %v631_v30, %v631_v30  ;;  %v640_v36 = vmul.f32 %v632_v1, %v632_v1 }
 0x6a1   :  { %v647_v37 = vadd.f32 %v640_v36, %v639_v35  ;;  %v641_v38 = vmul.f32 %v633_v31, %v633_v31  ;;  %v642_v14 = vmul.f32 %v634_v32, %v634_v32 }
 0x6a2   :  { %v623_v13 = vpop.xlane.xlu0 %622 }
 0x6a3   :  { %v629_v16 = vmul.f32 0.00390625, %v623_v13  ;;  %648 = vadd.xlane.f32.xlu0 %v647_v37  ;;  %v650_v17 = vadd.f32 %v642_v14, %v641_v38 }
 0x6a4   :  { %v626_v41 = vpop.xlane.xlu1 %625 }
 0x6a5   :  { %v635_v42 = vsub.f32 %v606_v23, %v629_v16  ;;  %v636_v43 = vsub.f32 %v608_v24, %v629_v16  ;;  %v630_v44 = vmul.f32 0.00390625, %v626_v41  ;;  %651 = vadd.xlane.f32.xlu1 %v650_v17 }
 0x6a7   :  { %v637_v45 = vsub.f32 %v610_v25, %v630_v44  ;;  %v638_v48 = vsub.f32 %v612_v27, %v630_v44  ;;  %v643_v49 = vmul.f32 %v635_v42, %v635_v42  ;;  %v644_v50 = vmul.f32 %v636_v43, %v636_v43 }
 0x6a9   :  { %v653_v51 = vadd.f32 %v644_v50, %v643_v49  ;;  %v645_v52 = vmul.f32 %v637_v45, %v637_v45  ;;  %v646_v55 = vmul.f32 %v638_v48, %v638_v48 }
 0x6ab   :  { %654 = vadd.xlane.f32.xlu0 %v653_v51  ;;  %v656_v56 = vadd.f32 %v646_v55, %v645_v52 }
 0x6ad   :  { %657 = vadd.xlane.f32.xlu1 %v656_v56 }
 0x730   :  { %v649_v57 = vpop.xlane.xlu0 %648 }
 0x731   :  { %v659_v58 = vmul.f32 0.00390625, %v649_v57 }
 0x732   :  { %v652_v59 = vpop.xlane.xlu1 %651 }
 0x733   :  { %v663_v60 = vadd.f32 1e-05, %v659_v58  ;;  %v660_v63 = vmul.f32 0.00390625, %v652_v59 }
 0x735   :  { %1115 = vrsqrt.f32 %v663_v60  ;;  %v664_v0 = vadd.f32 1e-05, %v660_v63 }
 0x737   :  { %1117 = vrsqrt.f32 %v664_v0 }
 0x738   :  { %v655_v34 = vpop.xlane.xlu0 %654 }
 0x739   :  { %v661_v4 = vmul.f32 0.00390625, %v655_v34 }
 0x73a   :  { %v658_v33 = vpop.xlane.xlu1 %657 }
 0x73b   :  { %v665_v5 = vadd.f32 1e-05, %v661_v4  ;;  %v662_v40 = vmul.f32 0.00390625, %v658_v33 }
 0x73d   :  { %1119 = vrsqrt.f32 %v665_v5  ;;  %v666_v39 = vadd.f32 1e-05, %v662_v40 }
 0x73f   :  { %v1116_v6 = vpop.eup %1115  ;;  %1121 = vrsqrt.f32 %v666_v39 }
 0x740   :  { %v672_v7 = vmul.f32 %v1116_v6, %v632_v1  ;;  %v671_v8 = vmul.f32 %v1116_v6, %v631_v30  ;;  %v1088_v30 = vld [vmem:[%s1461_s5 + $0x10] sm:$0xff]   ;;  %v1089_v1 = vld [vmem:[%s1461_s5 + $0x18] sm:$0xff]  }
 0x741   :  { %v1118_v9 = vpop.eup %1117 }
 0x742   :  { %v674_v10 = vmul.f32 %v1118_v9, %v634_v32  ;;  %v673_v11 = vmul.f32 %v1118_v9, %v633_v31  ;;  %v680_v12 = vmax.f32 %v672_v7, 0.0  ;;  %v679_v18 = vmax.f32 %v671_v8, 0.0 }
 0x744   :  { %v682_v15 = vmax.f32 %v674_v10, 0.0  ;;  %v681_v19 = vmax.f32 %v673_v11, 0.0 }
 0x746   :  { %v688_v47 = vpack.c.bf16 %v682_v15, %v680_v12  ;;  %v687_v20 = vpack.c.bf16 %v681_v19, %v679_v18 }
 0x747   :  { %v1120_v46 = vpop.eup %1119 }
 0x748   :  { %731 = vmatprep.subr.bf16.mxu1 %v688_v47  ;;  %v676_v21 = vmul.f32 %v1120_v46, %v636_v43  ;;  %v675_v22 = vmul.f32 %v1120_v46, %v635_v42 }
 0x749   :  { %v1122_v54 = vpop.eup %1121  ;;  %732 = vmatpush1.bf16.msra.mxu1 %v687_v20 }
 0x74a   :  { %v678_v53 = vmul.f32 %v1122_v54, %v638_v48  ;;  %v677_v23 = vmul.f32 %v1122_v54, %v637_v45  ;;  %v684_v24 = vmax.f32 %v676_v21, 0.0  ;;  %v683_v26 = vmax.f32 %v675_v22, 0.0 }
 0x74c   :  { %v686_v25 = vmax.f32 %v678_v53, 0.0  ;;  %v685_v27 = vmax.f32 %v677_v23, 0.0 }
 0x74e   :  { %v690_v28 = vpack.c.bf16 %v686_v25, %v684_v24  ;;  %v689_v29 = vpack.c.bf16 %v685_v27, %v683_v26 }
 0x750   :  { %733 = vmatprep.subr.bf16.mxu1 %v690_v28 }
 0x751   :  { %734 = vmatpush1.bf16.msra.mxu1 %v689_v29 }
 0x754   :  { %1055 = vmatmul.mubr.msk.bf16.vlgmr.msra.gmra.mrb[12].mxu1 %vm470_vm2, %v1086_v61 }
 0x755   :  { %773 = vmatprep.mubr.bf16.mxu1 %v1163_v2 }
 0x75c   :  { %1056 = vmatmul.mubr.msk.bf16.gmra.mrb[16].mxu1 %vm470_vm2, %v1087_v62 }
 0x75d   :  { %783 = vmatprep.mubr.bf16.mxu1 %v1163_v2 }
 0x764   :  { %1057 = vmatmul.mubr.msk.bf16.gmra.mrb[20].mxu1 %vm470_vm2, %v1088_v30 }
 0x765   :  { %793 = vmatprep.mubr.bf16.mxu1 %v1163_v2 }
 0x76c   :  { %1058 = vmatmul.mubr.msk.bf16.gmra.mrb[24].mxu1 %vm470_vm2, %v1089_v1 }
 0x827   :  { %v765_v3 = vpop.f32.mrb[12].mxu1 }
 0x828   :  { %v767_v31 = vpop.f32.mrb[13].mxu1 }
 0x829   :  { %v769_v32 = vpop.f32.mrb[14].mxu1  ;;  %v804_v35 = vadd.f32 %v767_v31, %v765_v3 }
 0x82a   :  { %v771_v36 = vpop.f32.mrb[15].mxu1 }
 0x82b   :  { %805 = vadd.xlane.f32.xlu0 %v804_v35  ;;  %v807_v37 = vadd.f32 %v771_v36, %v769_v32 }
 0x82d   :  { %808 = vadd.xlane.f32.xlu1 %v807_v37 }
 0x82f   :  { %v775_v38 = vpop.f32.mrb[16].mxu1 }
 0x830   :  { %v777_v14 = vpop.f32.mrb[17].mxu1 }
 0x831   :  { %v779_v13 = vpop.f32.mrb[18].mxu1  ;;  %v810_v16 = vadd.f32 %v777_v14, %v775_v38 }
 0x832   :  { %v781_v17 = vpop.f32.mrb[19].mxu1 }
 0x833   :  { %811 = vadd.xlane.f32.xlu0 %v810_v16  ;;  %v813_v2 = vadd.f32 %v781_v17, %v779_v13 }
 0x835   :  { %814 = vadd.xlane.f32.xlu1 %v813_v2 }
 0x837   :  { %v785_v41 = vpop.f32.mrb[20].mxu1 }
 0x838   :  { %v787_v42 = vpop.f32.mrb[21].mxu1 }
 0x839   :  { %v789_v43 = vpop.f32.mrb[22].mxu1  ;;  %v816_v44 = vadd.f32 %v787_v42, %v785_v41 }
 0x83a   :  { %v791_v45 = vpop.f32.mrb[23].mxu1 }
 0x83b   :  { %817 = vadd.xlane.f32.xlu0 %v816_v44  ;;  %v819_v48 = vadd.f32 %v791_v45, %v789_v43 }
 0x83d   :  { %820 = vadd.xlane.f32.xlu1 %v819_v48 }
 0x83f   :  { %v795_v49 = vpop.f32.mrb[24].mxu1 }
 0x840   :  { %v797_v50 = vpop.f32.mrb[25].mxu1 }
 0x841   :  { %v799_v51 = vpop.f32.mrb[26].mxu1  ;;  %v822_v52 = vadd.f32 %v797_v50, %v795_v49 }
 0x842   :  { %v801_v55 = vpop.f32.mrb[27].mxu1 }
 0x843   :  { %v825_v56 = vadd.f32 %v801_v55, %v799_v51  ;;  %823 = vadd.xlane.f32.xlu0 %v822_v52 }
 0x845   :  { %826 = vadd.xlane.f32.xlu1 %v825_v56 }
 0x8b8   :  { %v806_v57 = vpop.xlane.xlu0 %805 }
 0x8b9   :  { %v828_v58 = vmul.f32 0.00390625, %v806_v57 }
 0x8ba   :  { %v809_v59 = vpop.xlane.xlu1 %808 }
 0x8bb   :  { %v1360_v60 = vsub.f32 %v765_v3, %v828_v58  ;;  %v1362_v63 = vsub.f32 %v767_v31, %v828_v58  ;;  %v829_v0 = vmul.f32 0.00390625, %v809_v59 }
 0x8bd   :  { %v1364_v34 = vsub.f32 %v769_v32, %v829_v0  ;;  %v1366_v4 = vsub.f32 %v771_v36, %v829_v0  ;;  %v852_v33 = vmul.f32 %v1360_v60, %v1360_v60  ;;  %v853_v5 = vmul.f32 %v1362_v63, %v1362_v63 }
 0x8bf   :  { %v868_v40 = vadd.f32 %v853_v5, %v852_v33  ;;  %v854_v39 = vmul.f32 %v1364_v34, %v1364_v34  ;;  %v855_v6 = vmul.f32 %v1366_v4, %v1366_v4 }
 0x8c0   :  { %v812_v7 = vpop.xlane.xlu0 %811 }
 0x8c1   :  { %v830_v8 = vmul.f32 0.00390625, %v812_v7  ;;  %869 = vadd.xlane.f32.xlu0 %v868_v40  ;;  %v871_v9 = vadd.f32 %v855_v6, %v854_v39 }
 0x8c2   :  { %v815_v10 = vpop.xlane.xlu1 %814 }
 0x8c3   :  { %v1376_v11 = vsub.f32 %v775_v38, %v830_v8  ;;  %v1378_v12 = vsub.f32 %v777_v14, %v830_v8  ;;  %v831_v15 = vmul.f32 0.00390625, %v815_v10  ;;  %872 = vadd.xlane.f32.xlu1 %v871_v9 }
 0x8c5   :  { %v1380_v18 = vsub.f32 %v779_v13, %v831_v15  ;;  %v1382_v19 = vsub.f32 %v781_v17, %v831_v15  ;;  %v856_v47 = vmul.f32 %v1376_v11, %v1376_v11  ;;  %v857_v20 = vmul.f32 %v1378_v12, %v1378_v12 }
 0x8c7   :  { %v874_v46 = vadd.f32 %v857_v20, %v856_v47  ;;  %v858_v21 = vmul.f32 %v1380_v18, %v1380_v18  ;;  %v859_v22 = vmul.f32 %v1382_v19, %v1382_v19 }
 0x8c8   :  { %v818_v54 = vpop.xlane.xlu0 %817 }
 0x8c9   :  { %v832_v53 = vmul.f32 0.00390625, %v818_v54  ;;  %875 = vadd.xlane.f32.xlu0 %v874_v46  ;;  %v877_v23 = vadd.f32 %v859_v22, %v858_v21 }
 0x8ca   :  { %v821_v24 = vpop.xlane.xlu1 %820 }
 0x8cb   :  { %v1392_v25 = vsub.f32 %v785_v41, %v832_v53  ;;  %v1394_v26 = vsub.f32 %v787_v42, %v832_v53  ;;  %v833_v27 = vmul.f32 0.00390625, %v821_v24  ;;  %878 = vadd.xlane.f32.xlu1 %v877_v23 }
 0x8cd   :  { %v1396_v28 = vsub.f32 %v789_v43, %v833_v27  ;;  %v1398_v29 = vsub.f32 %v791_v45, %v833_v27  ;;  %v860_v61 = vmul.f32 %v1392_v25, %v1392_v25  ;;  %v861_v62 = vmul.f32 %v1394_v26, %v1394_v26 }
 0x8cf   :  { %v880_v30 = vadd.f32 %v861_v62, %v860_v61  ;;  %v862_v1 = vmul.f32 %v1396_v28, %v1396_v28  ;;  %v863_v3 = vmul.f32 %v1398_v29, %v1398_v29 }
 0x8d0   :  { %v824_v31 = vpop.xlane.xlu0 %823 }
 0x8d1   :  { %v834_v32 = vmul.f32 0.00390625, %v824_v31  ;;  %881 = vadd.xlane.f32.xlu0 %v880_v30  ;;  %v883_v35 = vadd.f32 %v863_v3, %v862_v1 }
 0x8d2   :  { %v827_v36 = vpop.xlane.xlu1 %826 }
 0x8d3   :  { %v1408_v37 = vsub.f32 %v795_v49, %v834_v32  ;;  %v1410_v38 = vsub.f32 %v797_v50, %v834_v32  ;;  %v835_v14 = vmul.f32 0.00390625, %v827_v36  ;;  %884 = vadd.xlane.f32.xlu1 %v883_v35 }
 0x8d5   :  { %v1412_v13 = vsub.f32 %v799_v51, %v835_v14  ;;  %v1414_v16 = vsub.f32 %v801_v55, %v835_v14  ;;  %v864_v17 = vmul.f32 %v1408_v37, %v1408_v37  ;;  %v865_v2 = vmul.f32 %v1410_v38, %v1410_v38 }
 0x8d7   :  { %v886_v41 = vadd.f32 %v865_v2, %v864_v17  ;;  %v866_v42 = vmul.f32 %v1412_v13, %v1412_v13  ;;  %v867_v43 = vmul.f32 %v1414_v16, %v1414_v16 }
 0x8d9   :  { %887 = vadd.xlane.f32.xlu0 %v886_v41  ;;  %v889_v44 = vadd.f32 %v867_v43, %v866_v42 }
 0x8db   :  { %890 = vadd.xlane.f32.xlu1 %v889_v44 }
 0x94e   :  { %v870_v45 = vpop.xlane.xlu0 %869 }
 0x94f   :  { %v892_v48 = vmul.f32 0.00390625, %v870_v45 }
 0x950   :  { %v873_v49 = vpop.xlane.xlu1 %872 }
 0x951   :  { %v900_v50 = vadd.f32 1e-05, %v892_v48  ;;  %v893_v51 = vmul.f32 0.00390625, %v873_v49 }
 0x953   :  { %1123 = vrsqrt.f32 %v900_v50  ;;  %v901_v52 = vadd.f32 1e-05, %v893_v51 }
 0x955   :  { %1125 = vrsqrt.f32 %v901_v52 }
 0x956   :  { %v876_v55 = vpop.xlane.xlu0 %875 }
 0x957   :  { %v894_v56 = vmul.f32 0.00390625, %v876_v55 }
 0x958   :  { %v879_v57 = vpop.xlane.xlu1 %878 }
 0x959   :  { %v902_v58 = vadd.f32 1e-05, %v894_v56  ;;  %v895_v59 = vmul.f32 0.00390625, %v879_v57 }
 0x95b   :  { %1127 = vrsqrt.f32 %v902_v58  ;;  %v903_v0 = vadd.f32 1e-05, %v895_v59 }
 0x95d   :  { %v1124_v33 = vpop.eup %1123  ;;  %1129 = vrsqrt.f32 %v903_v0 }
 0x95e   :  { %v882_v5 = vpop.xlane.xlu0 %881  ;;  %v917_v40 = vmul.f32 %v1124_v33, %v1362_v63  ;;  %v916_v39 = vmul.f32 %v1124_v33, %v1360_v60  ;;  %v1090_v33 = vld [vmem:[%s1462_s6] sm:$0xff]  }
 0x95f   :  { %v1126_v6 = vpop.eup %1125  ;;  %v896_v7 = vmul.f32 0.00390625, %v882_v5 }
 0x960   :  { %v885_v8 = vpop.xlane.xlu1 %884  ;;  %v919_v9 = vmul.f32 %v1126_v6, %v1366_v4  ;;  %v918_v10 = vmul.f32 %v1126_v6, %v1364_v34  ;;  %v933_v20 = vmax.f32 %v917_v40, 0.0  ;;  %v932_v21 = vmax.f32 %v916_v39, 0.0 }
 0x961   :  { %v904_v15 = vadd.f32 1e-05, %v896_v7  ;;  %v897_v47 = vmul.f32 0.00390625, %v885_v8 }
 0x962   :  { %v935_v46 = vmax.f32 %v919_v9, 0.0  ;;  %v934_v22 = vmax.f32 %v918_v10, 0.0 }
 0x963   :  { %1131 = vrsqrt.f32 %v904_v15  ;;  %v905_v54 = vadd.f32 1e-05, %v897_v47 }
 0x964   :  { %v949_v53 = vpack.c.bf16 %v935_v46, %v933_v20  ;;  %v948_v23 = vpack.c.bf16 %v934_v22, %v932_v21 }
 0x965   :  { %v1128_v63 = vpop.eup %1127  ;;  %1133 = vrsqrt.f32 %v905_v54 }
 0x966   :  { %v888_v60 = vpop.xlane.xlu0 %887  ;;  %966 = vmatprep.subr.bf16.mxu0 %v949_v53  ;;  %v921_v24 = vmul.f32 %v1128_v63, %v1378_v12  ;;  %v920_v4 = vmul.f32 %v1128_v63, %v1376_v11 }
 0x967   :  { %v1130_v27 = vpop.eup %1129  ;;  %v898_v34 = vmul.f32 0.00390625, %v888_v60  ;;  %967 = vmatpush1.bf16.msra.mxu0 %v948_v23 }
 0x968   :  { %v891_v61 = vpop.xlane.xlu1 %890  ;;  %v923_v62 = vmul.f32 %v1130_v27, %v1382_v19  ;;  %v922_v30 = vmul.f32 %v1130_v27, %v1380_v18  ;;  %v937_v31 = vmax.f32 %v921_v24, 0.0  ;;  %v936_v35 = vmax.f32 %v920_v4, 0.0 }
 0x969   :  { %v906_v1 = vadd.f32 1e-05, %v898_v34  ;;  %v899_v3 = vmul.f32 0.00390625, %v891_v61 }
 0x96a   :  { %v939_v32 = vmax.f32 %v923_v62, 0.0  ;;  %v938_v36 = vmax.f32 %v922_v30, 0.0 }
 0x96b   :  { %1135 = vrsqrt.f32 %v906_v1  ;;  %v907_v14 = vadd.f32 1e-05, %v899_v3 }
 0x96c   :  { %v951_v17 = vpack.c.bf16 %v939_v32, %v937_v31  ;;  %v950_v12 = vpack.c.bf16 %v938_v36, %v936_v35 }
 0x96d   :  { %v1132_v2 = vpop.eup %1131  ;;  %1137 = vrsqrt.f32 %v907_v14 }
 0x96e   :  { %968 = vmatprep.subr.bf16.mxu0 %v951_v17  ;;  %v925_v11 = vmul.f32 %v1132_v2, %v1394_v26  ;;  %v924_v41 = vmul.f32 %v1132_v2, %v1392_v25 }
 0x96f   :  { %v1134_v19 = vpop.eup %1133  ;;  %969 = vmatpush1.bf16.msra.mxu0 %v950_v12 }
 0x970   :  { %v927_v18 = vmul.f32 %v1134_v19, %v1398_v29  ;;  %v926_v42 = vmul.f32 %v1134_v19, %v1396_v28  ;;  %v941_v43 = vmax.f32 %v925_v11, 0.0  ;;  %v940_v45 = vmax.f32 %v924_v41, 0.0 }
 0x972   :  { %v943_v44 = vmax.f32 %v927_v18, 0.0  ;;  %v942_v48 = vmax.f32 %v926_v42, 0.0 }
 0x974   :  { %v953_v49 = vpack.c.bf16 %v943_v44, %v941_v43  ;;  %v952_v50 = vpack.c.bf16 %v942_v48, %v940_v45 }
 0x975   :  { %v1136_v51 = vpop.eup %1135 }
 0x976   :  { %970 = vmatprep.subr.bf16.mxu0 %v953_v49  ;;  %v929_v52 = vmul.f32 %v1136_v51, %v1410_v38  ;;  %v928_v26 = vmul.f32 %v1136_v51, %v1408_v37 }
 0x977   :  { %v1138_v55 = vpop.eup %1137  ;;  %971 = vmatpush1.bf16.msra.mxu0 %v952_v50 }
 0x978   :  { %v931_v25 = vmul.f32 %v1138_v55, %v1414_v16  ;;  %v930_v29 = vmul.f32 %v1138_v55, %v1412_v13  ;;  %v945_v56 = vmax.f32 %v929_v52, 0.0  ;;  %v944_v57 = vmax.f32 %v928_v26, 0.0 }
 0x97a   :  { %v947_v28 = vmax.f32 %v931_v25, 0.0  ;;  %v946_v58 = vmax.f32 %v930_v29, 0.0 }
 0x97c   :  { %v955_v59 = vpack.c.bf16 %v947_v28, %v945_v56  ;;  %v954_v0 = vpack.c.bf16 %v946_v58, %v944_v57 }
 0x97e   :  { %972 = vmatprep.subr.bf16.mxu0 %v955_v59 }
 0x97f   :  { %973 = vmatpush1.bf16.msra.mxu0 %v954_v0 }
 0x982   :  { %1060 = vmatmul.mubr.msk.bf16.vlgmr.msra.gmra.mrb[28].mxu0 %vm320_vm1, %v1090_v33 }
 0xa55   :  { %v1000_v37 = vpop.f32.mrb[28].mxu0 }
 0xa56   :  { %1009 = vst [vmem:[#allocation2] sm:$0xff] %v1000_v37  ;;  %v1002_v38 = vpop.f32.mrb[29].mxu0 }
 0xa57   :  { %1010 = vst [vmem:[#allocation2 + $0x8] sm:$0xff] %v1002_v38  ;;  %v1004_v13 = vpop.f32.mrb[30].mxu0 }
 0xa58   :  { %1011 = vst [vmem:[#allocation2 + $0x10] sm:$0xff] %v1004_v13  ;;  %v1006_v16 = vpop.f32.mrb[31].mxu0 }
 0xa59   :  { %1012 = vst [vmem:[#allocation2 + $0x18] sm:$0xff] %v1006_v16 }
 0xa5a   :  { %1150 = shalt.err (!%p1147_p4)
}
 0xa5b   :  { %s1151_s9 = scalar_lea.hbm %s1463_s7, 512 }
 0xa5c   :  { %p1152_p5 = scmp.ne.s32.totalorder %s1463_s7, %s1151_s9  ;;  %p1155_p6 = scmp.lt.u32.totalorder %s1151_s9, %s1463_s7 }
 0xa5e   :  { %p1157_p7 = pnand %p1155_p6, %p1152_p5 }
 0xa60   :  { %1160 = shalt.err (!%p1157_p7)
}
 0xa61   :  { %s1165_s13 = smov 256   ;;  %s1166_s14 = smov 16  }
 0xa62   :  { %1024 = dma.vmem_to_hbm [thread:$0]  %s1019_s30, 512, %s1463_s7, [#allocation3], %s1165_s13, %s1165_s13, %s1166_s14  }
 0xa63   :  { %1161 = dma.done.wait [#allocation3], 512  }
 0xa64   :  { %1162 = vsyncadd [#allocation3], 4294966784 }
 0xa65   :  { %1028 = vsyncpa [#allocation3], 1 }

</bundles_post_ra>
